<compile_context>
chip_gen: v7x
topology: tpu7x:2x2x1
jax: 0.10.0
libtpu: 0.0.40
codegen_flags: <defaults>
</compile_context>

<pallas_src>
import functools
import math

import jax
import jax.numpy as jnp
from jax.experimental import pallas as pl
from jax.experimental.pallas import tpu as pltpu

LRELU_SLOPE = 0.2
BN_EPS = 1e-5
MAX_TILE_M = 256                      # sublane-dim tile cap
MAX_TILE_N = 512                      # lane-dim tile cap (multiple of 256 -> fills MXU)
WEIGHT_PANEL_ELEMS = 3 * 1024 * 1024  # tk*tn cap: 6 MiB bf16 panel, 12 MiB double-buffered
VMEM_LIMIT = 32 * 1024 * 1024         # explicit scoped-VMEM budget (safe on v5e/v6e/v7x)


def _round_up(x, m):
    return (x + m - 1) // m * m


# --------------------------------------------------------------------------
# Pallas kernels
# --------------------------------------------------------------------------

def _mm_bn_act_single_kernel(a_ref, b_ref, scale_ref, shift_ref, o_ref,
                             *, negative_slope):
    """Full-K matmul (bf16 in, f32 acc) + per-channel scale/shift + LeakyReLU."""
    y = jnp.dot(a_ref[0], b_ref[0], preferred_element_type=jnp.float32)
    y = y * scale_ref[0] + shift_ref[0]
    if negative_slope is not None:
        y = jnp.where(y > 0, y, negative_slope * y)
    o_ref[0] = y.astype(o_ref.dtype)


def _bmm_bn_act_kernel(a_ref, b_ref, scale_ref, shift_ref, o_ref, acc_ref,
                       *, negative_slope):
    """K-tiled matmul with f32 accumulator scratch + fused epilogue on the last step."""
    k = pl.program_id(3)

    @pl.when(k == 0)
    def _():
        acc_ref[...] = jnp.zeros_like(acc_ref)

    acc_ref[...] += jnp.dot(a_ref[0], b_ref[0],
                            preferred_element_type=jnp.float32)

    @pl.when(k == pl.num_programs(3) - 1)
    def _():
        y = acc_ref[...] * scale_ref[0] + shift_ref[0]
        if negative_slope is not None:
            y = jnp.where(y > 0, y, negative_slope * y)
        o_ref[0] = y.astype(o_ref.dtype)


def _choose_tiles(M, K, N):
    """Pick (tm, tk, tn, Mp).  Never pads K or N (full dims / 128-multiple splits)."""
    # N tile (lane dim): split only if N is a large multiple of MAX_TILE_N.
    if N > MAX_TILE_N and N % MAX_TILE_N == 0:
        tn = MAX_TILE_N
    else:
        tn = N
    # K tile: keep the whole reduction (resident weights) when the panel fits budget;
    # otherwise split at the largest 128-multiple divisor under the budget.
    max_tk = max(128, WEIGHT_PANEL_ELEMS // max(tn, 1))
    if K <= max_tk or K % 128 != 0:
        tk = K
    else:
        tk = 128
        d = 256
        while d <= max_tk:
            if K % d == 0:
                tk = d
            d += 128
    # M tile (sublane dim): full dim when small, otherwise MAX_TILE_M with a tiny pad.
    if M <= MAX_TILE_M:
        tm, Mp = M, M
    else:
        tm = MAX_TILE_M
        Mp = _round_up(M, tm)
    return tm, tk, tn, Mp


def fused_matmul(a, layer, negative_slope=None, out_dtype=jnp.bfloat16):
    """a: (E, M, K) -> (E, M, N) = (a @ W) * scale + shift (+LeakyReLU) per E slice.

    W: (E, K, N) bf16, scale/shift: (E, 1, N) f32 (BN folded with the conv bias).
    """
    E, M, K = a.shape
    w = layer["w"]
    assert w.shape[0] == E and w.shape[1] == K, (w.shape, a.shape)
    N = w.shape[2]
    tm, tk, tn, Mp = _choose_tiles(M, K, N)

    a = a.astype(jnp.bfloat16)
    if Mp != M:
        a = jnp.pad(a, ((0, 0), (0, Mp - M), (0, 0)))
    n_k = K // tk

    if n_k == 1:
        grid = (E, Mp // tm, N // tn)
        out = pl.pallas_call(
            functools.partial(_mm_bn_act_single_kernel,
                              negative_slope=negative_slope),
            out_shape=jax.ShapeDtypeStruct((E, Mp, N), out_dtype),
            grid_spec=pltpu.PrefetchScalarGridSpec(
                num_scalar_prefetch=0,
                grid=grid,
                in_specs=[
                    pl.BlockSpec((1, tm, K), lambda e, i, j: (e, i, 0)),
                    pl.BlockSpec((1, K, tn), lambda e, i, j: (e, 0, j)),
                    pl.BlockSpec((1, 1, tn), lambda e, i, j: (e, 0, j)),
                    pl.BlockSpec((1, 1, tn), lambda e, i, j: (e, 0, j)),
                ],
                out_specs=pl.BlockSpec((1, tm, tn), lambda e, i, j: (e, i, j)),
            ),
            compiler_params=pltpu.CompilerParams(
                dimension_semantics=("parallel", "parallel", "parallel"),
                vmem_limit_bytes=VMEM_LIMIT),
        )(a, w, layer["scale"], layer["shift"])
    else:
        grid = (E, Mp // tm, N // tn, n_k)
        out = pl.pallas_call(
            functools.partial(_bmm_bn_act_kernel, negative_slope=negative_slope),
            out_shape=jax.ShapeDtypeStruct((E, Mp, N), out_dtype),
            grid_spec=pltpu.PrefetchScalarGridSpec(
                num_scalar_prefetch=0,
                grid=grid,
                in_specs=[
                    pl.BlockSpec((1, tm, tk), lambda e, i, j, k: (e, i, k)),
                    pl.BlockSpec((1, tk, tn), lambda e, i, j, k: (e, k, j)),
                    pl.BlockSpec((1, 1, tn), lambda e, i, j, k: (e, 0, j)),
                    pl.BlockSpec((1, 1, tn), lambda e, i, j, k: (e, 0, j)),
                ],
                out_specs=pl.BlockSpec((1, tm, tn), lambda e, i, j, k: (e, i, j)),
                scratch_shapes=[pltpu.VMEM((tm, tn), jnp.float32)],
            ),
            compiler_params=pltpu.CompilerParams(
                dimension_semantics=("parallel", "parallel", "parallel", "arbitrary"),
                vmem_limit_bytes=VMEM_LIMIT),
        )(a, w, layer["scale"], layer["shift"])

    if Mp != M:
        out = out[:, :M, :]
    return out


def maxpool2x2(x):
    """F.max_pool2d(x, 2) on NHWC: single pass over x via a blocked Pallas kernel.

    x is reshaped (for free, pure row-major dim splits/merges) to
    (N, H/2, 2, W/2, 2*C); the kernel takes the row-pair max, then the column-pair
    max via a lane slice — no strided views or extra HBM copies.
    """
    N, H, W, C = x.shape
    assert H % 2 == 0 and W % 2 == 0, "maxpool2x2 expects even spatial dims"
    Ho, Wo = H // 2, W // 2
    xr = x.reshape(N, Ho, 2, Wo, 2 * C)

    # Row-pair block that divides Ho and keeps the input block under ~2 MiB.
    bytes_per_rowpair = 2 * W * C * x.dtype.itemsize
    cap = max(1, (2 * 1024 * 1024) // bytes_per_rowpair)
    bh = 1
    for cand in range(min(Ho, cap), 0, -1):
        if Ho % cand == 0:
            bh = cand
            break

    def kernel(x_ref, o_ref):
        v = x_ref[0]                           # (bh, 2, Wo, 2C)
        m = jnp.maximum(v[:, 0], v[:, 1])      # (bh, Wo, 2C)  row-pair max
        o_ref[0] = jnp.maximum(m[..., :C], m[..., C:])  # column-pair max

    out = pl.pallas_call(
        kernel,
        out_shape=jax.ShapeDtypeStruct((N, Ho, Wo, C), x.dtype),
        grid_spec=pltpu.PrefetchScalarGridSpec(
            num_scalar_prefetch=0,
            grid=(N, Ho // bh),
            in_specs=[pl.BlockSpec((1, bh, 2, Wo, 2 * C),
                                   lambda n, i: (n, i, 0, 0, 0))],
            out_specs=pl.BlockSpec((1, bh, Wo, C), lambda n, i: (n, i, 0, 0)),
        ),
        compiler_params=pltpu.CompilerParams(
            dimension_semantics=("parallel", "parallel"),
            vmem_limit_bytes=VMEM_LIMIT),
    )(xr)
    return out


# --------------------------------------------------------------------------
# Conv / ConvTranspose built on the batched Pallas matmul
# --------------------------------------------------------------------------

def _extract_patches(x, kh, kw, pad):
    # TODO(synk): move this gather into the matmul kernel (Element-indexed taps) to
    # avoid materializing the kh*kw-times-inflated patch matrix in HBM.
    if pad:
        x = jnp.pad(x, ((0, 0), (pad, pad), (pad, pad), (0, 0)))
    N, H, W, C = x.shape
    OH, OW = H - kh + 1, W - kw + 1
    cols = [x[:, di:di + OH, dj:dj + OW, :]
            for di in range(kh) for dj in range(kw)]
    return jnp.concatenate(cols, axis=-1)  # (N, OH, OW, kh*kw*C)


def conv2d(x, layer, padding, leaky, out_dtype=jnp.bfloat16):
    """Batched Conv2d (+BN inference + LeakyReLU) over leading stack axis E.

    x: (E, B, H, W, Cin); layer carries per-E weights stacked along E.
    """
    E, B, H, W, C = x.shape
    K = layer["w"].shape[1]
    cout = layer["w"].shape[2]
    ksize = math.isqrt(K // C)          # K = ksize^2 * Cin (static: shapes only)
    xf = x.reshape(E * B, H, W, C).astype(jnp.bfloat16)
    patches = _extract_patches(xf, ksize, ksize, padding)
    _, OH, OW, Kp = patches.shape
    A = patches.reshape(E, B * OH * OW, Kp)
    out = fused_matmul(A, layer,
                       negative_slope=LRELU_SLOPE if leaky else None,
                       out_dtype=out_dtype)
    return out.reshape(E, B, OH, OW, cout)


def dconv(x, layer, padding, leaky, out_dtype=jnp.bfloat16):
    """Single (E=1) conv for the decoder path.  x: (B, H, W, C)."""
    return conv2d(x[None], layer, padding, leaky, out_dtype)[0]


def conv_transpose2d(x, layer):
    """ConvTranspose2d(k=4, s=2, p=1) via the 4-parity sub-convolution decomposition.

    Output pixel (2m+py, 2n+px) only sees a 2x2 input window, so the whole op is one
    E=4 batched matmul with K = 4*Cin (4x fewer MXU FLOPs, no zero-dilated tensor).
    Weight taps per parity are packed at parameter-build time (see pack_deconv_weights).
    """
    B, H, W, C = x.shape
    xb = x.astype(jnp.bfloat16)
    patches = []
    for py in range(2):
        for px in range(2):
            xp = jnp.pad(xb, ((0, 0), (1 - py, py), (1 - px, px), (0, 0)))
            cols = [xp[:, dy:dy + H, dx:dx + W, :]
                    for dy in range(2) for dx in range(2)]
            patches.append(jnp.concatenate(cols, axis=-1).reshape(B * H * W, 4 * C))
    A = jnp.stack(patches)                               # (4, B*H*W, 4*Cin)
    out = fused_matmul(A, layer, negative_slope=None)    # (4, B*H*W, Cout) bf16
    cout = layer["w"].shape[2]
    # TODO(synk): write the parity outputs directly interleaved from the kernel
    # (out_specs keyed on the parity axis) to avoid this transpose round trip.
    out = out.reshape(2, 2, B, H, W, cout)               # (py, px, B, m, n, c)
    out = jnp.transpose(out, (2, 3, 0, 4, 1, 5))         # (B, m, py, n, px, c)
    return out.reshape(B, 2 * H, 2 * W, cout)


# --------------------------------------------------------------------------
# Parameter packing / construction
# Layer dicts contain ONLY arrays (so they can be passed through jax.jit):
#   w: (E, K, N) bf16 matmul weight, scale/shift: (E, 1, N) f32 (BN+bias folded).
# --------------------------------------------------------------------------

def _fold_bn(bias, cout, with_bn):
    if with_bn:
        gamma = jnp.ones((cout,), jnp.float32)
        beta = jnp.zeros((cout,), jnp.float32)
        mean = jnp.zeros((cout,), jnp.float32)
        var = jnp.ones((cout,), jnp.float32)
        scale = gamma / jnp.sqrt(var + BN_EPS)
        shift = beta + scale * (bias - mean)
    else:
        scale = jnp.ones((cout,), jnp.float32)
        shift = bias.astype(jnp.float32)
    return scale, shift


def pack_conv_layers(w_list, b_list, with_bn):
    """w_list: list of (kh, kw, cin, cout) f32 (HWIO); stacks along E."""
    ws, scs, shs = [], [], []
    for w, b in zip(w_list, b_list):
        kh, kw, ci, co = w.shape
        scale, shift = _fold_bn(b, co, with_bn)
        ws.append(w.reshape(kh * kw * ci, co).astype(jnp.bfloat16))
        scs.append(scale.reshape(1, co))
        shs.append(shift.reshape(1, co))
    return {"w": jnp.stack(ws), "scale": jnp.stack(scs), "shift": jnp.stack(shs)}


def pack_deconv_weights(w_pt, b):
    """Pack a PyTorch-layout ConvTranspose2d weight (Cin, Cout, 4, 4) + bias.

    For output parity (py, px) and input-window offset (dy, dx) the contributing
    kernel tap is (kh, kw) = (3 - 2*dy - py, 3 - 2*dx - px)  [o = 2i - 1 + k].
    """
    ci, co = w_pt.shape[0], w_pt.shape[1]
    scale, shift = _fold_bn(b, co, with_bn=False)
    ws = []
    for py in range(2):
        for px in range(2):
            taps = []
            for dy in range(2):
                for dx in range(2):
                    taps.append(w_pt[:, :, 3 - 2 * dy - py, 3 - 2 * dx - px])
            ws.append(jnp.concatenate(taps, axis=0))     # (4*Cin, Cout)
    w = jnp.stack(ws).astype(jnp.bfloat16)               # (4, 4*Cin, Cout)
    sc = jnp.broadcast_to(scale.reshape(1, 1, co), (4, 1, co))
    sh = jnp.broadcast_to(shift.reshape(1, 1, co), (4, 1, co))
    return {"w": w, "scale": jnp.asarray(sc), "shift": jnp.asarray(sh)}


def make_conv_layer(key, cin, cout, ksize, with_bn, n_stack=1):
    std = math.sqrt(2.0 / (cout * ksize * ksize))     # kaiming_normal_, fan_out, relu
    bound = 1.0 / math.sqrt(cin * ksize * ksize)      # PyTorch default bias init range
    ws, bs = [], []
    for k in jax.random.split(key, n_stack):
        wk, bk = jax.random.split(k)
        ws.append(jax.random.normal(wk, (ksize, ksize, cin, cout), jnp.float32) * std)
        bs.append(jax.random.uniform(bk, (cout,), jnp.float32, -bound, bound))
    return pack_conv_layers(ws, bs, with_bn)


def make_convt_layer(key, cin, cout):
    # TODO(synk): PyTorch leaves ConvTranspose2d at its default kaiming_uniform(a=sqrt(5))
    # init (initialize_weights only touches Conv2d/Linear); we use a gaussian of similar
    # scale — the layer is randomly initialized either way.
    wk, bk = jax.random.split(key)
    std = math.sqrt(2.0 / (cout * 16))
    w = jax.random.normal(wk, (cin, cout, 4, 4), jnp.float32) * std
    bound = 1.0 / math.sqrt(cout * 16)
    b = jax.random.uniform(bk, (cout,), jnp.float32, -bound, bound)
    return pack_deconv_weights(w, b)


def make_encoder_stack_params(key):
    # One layer dict per conv, stacked along E = (encoder1/ct, encoder2/pet, encoder3/mri).
    # Encoder2.layer5 exists in __init__ but is never used in forward -> omitted.
    layer_defs = [("l1a", 1, 64), ("l1b", 64, 64),
                  ("l2a", 64, 128), ("l2b", 128, 128),
                  ("l3a", 128, 256), ("l3b", 256, 256),
                  ("l4a", 256, 512), ("l4b", 512, 512)]
    keys = jax.random.split(key, len(layer_defs))
    return {name: make_conv_layer(k, cin, cout, 3, True, n_stack=3)
            for (name, cin, cout), k in zip(layer_defs, keys)}


def make_decoder_params(key):
    ks = jax.random.split(key, 15)
    return {
        "l5a": make_conv_layer(ks[0], 512 * 3, 1024, 3, True),
        "l5b": make_conv_layer(ks[1], 1024, 1024, 3, True),
        "up4": make_convt_layer(ks[2], 1024, 512),
        "l4a": make_conv_layer(ks[3], 512 * 4, 512, 3, True),
        "l4b": make_conv_layer(ks[4], 512, 512, 3, True),
        "up3": make_convt_layer(ks[5], 512, 256),
        "l3a": make_conv_layer(ks[6], 256 * 4, 256, 3, True),
        "l3b": make_conv_layer(ks[7], 256, 256, 3, True),
        "up2": make_convt_layer(ks[8], 256, 128),
        "l2a": make_conv_layer(ks[9], 128 * 4, 128, 3, True),
        "l2b": make_conv_layer(ks[10], 128, 128, 3, True),
        "up1": make_convt_layer(ks[11], 128, 64),
        "l1a": make_conv_layer(ks[12], 64 * 4, 64, 3, True),
        "l1b": make_conv_layer(ks[13], 64, 64, 3, True),
        "l1c": make_conv_layer(ks[14], 64, 1, 1, False),
    }


def make_params(key):
    k_enc, k_dec = jax.random.split(key)
    return {"enc": make_encoder_stack_params(k_enc),
            "dec": make_decoder_params(k_dec)}


# --------------------------------------------------------------------------
# Model forward (use_padding=True branch)
# --------------------------------------------------------------------------

def _pool_stacked(t):
    E, B, H, W, C = t.shape
    return maxpool2x2(t.reshape(E * B, H, W, C)).reshape(E, B, H // 2, W // 2, C)


def encoders_forward(p, x):
    """Fused forward of the 3 encoders.  x: (3, B, H, W, 1) bf16."""
    x1 = conv2d(conv2d(x, p["l1a"], 1, True), p["l1b"], 1, True)
    x2 = conv2d(conv2d(_pool_stacked(x1), p["l2a"], 1, True), p["l2b"], 1, True)
    x3 = conv2d(conv2d(_pool_stacked(x2), p["l3a"], 1, True), p["l3b"], 1, True)
    x4 = conv2d(conv2d(_pool_stacked(x3), p["l4a"], 1, True), p["l4b"], 1, True)
    y = _pool_stacked(x4)
    return (y, x1, x2, x3, x4)


def _cat_skip(feat, extra=None):
    # feat: (3, B, H, W, C) -> channel-concat of (enc1, enc2, enc3) [+ decoder tensor].
    # TODO(synk): feed the sources as separate kernel inputs (per-source K segments)
    # once im2col is done in-kernel; the concat is an extra HBM copy until then.
    parts = [feat[0], feat[1], feat[2]]
    if extra is not None:
        parts.append(extra)
    return jnp.concatenate(parts, axis=-1)


def decoder_forward(p, feats):
    t = _cat_skip(feats[0])
    t = dconv(dconv(t, p["l5a"], 1, True), p["l5b"], 1, True)
    x4 = conv_transpose2d(t, p["up4"])

    t = _cat_skip(feats[4], x4)
    t = dconv(dconv(t, p["l4a"], 1, True), p["l4b"], 1, True)
    x3 = conv_transpose2d(t, p["up3"])

    t = _cat_skip(feats[3], x3)
    t = dconv(dconv(t, p["l3a"], 1, True), p["l3b"], 1, True)
    x2 = conv_transpose2d(t, p["up2"])

    t = _cat_skip(feats[2], x2)
    t = dconv(dconv(t, p["l2a"], 1, True), p["l2b"], 1, True)
    x1 = conv_transpose2d(t, p["up1"])

    t = _cat_skip(feats[1], x1)
    t = dconv(dconv(t, p["l1a"], 1, True), p["l1b"], 1, True)
    y = dconv(t, p["l1c"], 0, False, out_dtype=jnp.float32)  # final 1x1, no BN/act
    return y


def type2_forward(params, x_list, mri_type="T1"):
    # Type2Model.forward: T1 -> (x[0], x[1], x[2]); T2 -> (x[0], x[1], x[3]).
    # use_ct/use_pet/use_mri are all True, so the zero_encoding branch and the
    # redundant second encoder1(ct) evaluation are semantic no-ops.
    idx_mri = 2 if mri_type == "T1" else 3
    mods = [x_list[0], x_list[1], x_list[idx_mri]]
    stacked = jnp.stack([jnp.transpose(m, (0, 2, 3, 1)) for m in mods],
                        axis=0).astype(jnp.bfloat16)
    feats = encoders_forward(params["enc"], stacked)        # E=3 fused encoders
    y = decoder_forward(params["dec"], feats)
    return jnp.transpose(y, (0, 3, 1, 2)).astype(jnp.float32)  # NCHW (N,1,H,W)


# --------------------------------------------------------------------------
# Numerical reference self-tests (pure JAX references, bf16-tolerant thresholds)
# --------------------------------------------------------------------------

def _conv2d_ref(x, w_hwio, b, with_bn, leaky, padding):
    scale, shift = _fold_bn(b, w_hwio.shape[-1], with_bn)
    y = jax.lax.conv_general_dilated(
        x.astype(jnp.float32), w_hwio.astype(jnp.float32),
        window_strides=(1, 1), padding=[(padding, padding)] * 2,
        dimension_numbers=("NHWC", "HWIO", "NHWC"))
    y = y * scale + shift
    if leaky:
        y = jnp.where(y > 0, y, LRELU_SLOPE * y)
    return y


def _deconv_ref(x, w_pt, b):
    """PyTorch ConvTranspose2d(4, stride=2, padding=1) reference (NHWC)."""
    B, H, W, Ci = x.shape
    Co = w_pt.shape[1]
    y = jnp.zeros((B, 2 * H + 2, 2 * W + 2, Co), jnp.float32)
    xf = x.astype(jnp.float32)
    for kh in range(4):
        for kw in range(4):
            c = jnp.einsum("bhwc,cd->bhwd", xf, w_pt[:, :, kh, kw].astype(jnp.float32))
            y = y.at[:, kh:kh + 2 * H:2, kw:kw + 2 * W:2, :].add(c)
    return y[:, 1:2 * H + 1, 1:2 * W + 1, :] + b.astype(jnp.float32)


def _assert_close(name, got, ref):
    got = jnp.asarray(got, jnp.float32)
    ref = jnp.asarray(ref, jnp.float32)
    err = float(jnp.max(jnp.abs(got - ref)))
    mag = float(jnp.max(jnp.abs(ref))) + 1e-6
    assert err <= 0.05 * mag + 0.05, f"{name}: max err {err:.4f} vs magnitude {mag:.4f}"


def _self_test(key):
    k1, k2, k3, k4, k5 = jax.random.split(key, 5)
    # Conv2d (+BN +LeakyReLU)
    ci, co, B, H, W = 8, 16, 2, 10, 12
    w = jax.random.normal(k1, (3, 3, ci, co), jnp.float32) * 0.2
    b = jax.random.normal(k2, (co,), jnp.float32) * 0.1
    x = jax.random.normal(k3, (B, H, W, ci), jnp.float32)
    layer = pack_conv_layers([w], [b], with_bn=True)
    got = conv2d(x[None], layer, 1, True, out_dtype=jnp.float32)[0]
    _assert_close("conv2d", got, _conv2d_ref(x, w, b, True, True, 1))
    # ConvTranspose2d(4, 2, 1)
    ci, co = 8, 12
    wt = jax.random.normal(k4, (ci, co, 4, 4), jnp.float32) * 0.2
    bt = jax.random.normal(k5, (co,), jnp.float32) * 0.1
    xt = jax.random.normal(k3, (B, H, W, ci), jnp.float32)
    gott = conv_transpose2d(xt, pack_deconv_weights(wt, bt))
    _assert_close("conv_transpose2d", gott, _deconv_ref(xt, wt, bt))
    # MaxPool 2x2
    xm = jax.random.normal(k3, (B, 8, 8, 64), jnp.float32).astype(jnp.bfloat16)
    refm = jnp.max(xm.astype(jnp.float32).reshape(B, 4, 2, 4, 2, 64), axis=(2, 4))
    _assert_close("maxpool2x2", maxpool2x2(xm), refm)


# --------------------------------------------------------------------------

if __name__ == "__main__":
    key = jax.random.PRNGKey(0)
    tkey, pkey, dkey = jax.random.split(key, 3)

    _self_test(tkey)           # element-wise checks of conv / deconv / pool kernels

    params = make_params(pkey)

    B, H, W = 2, 16, 16
    xs_keys = jax.random.split(dkey, 4)
    # x mirrors the PyTorch input: a list of NCHW single-channel volumes
    # (ct, pet, mri_T1, mri_T2); T1 mode uses indices 0, 1, 2.
    x = [jax.random.normal(k, (B, 1, H, W), jnp.float32) for k in xs_keys]

    fwd = jax.jit(functools.partial(type2_forward, mri_type="T1"))
    out = jax.block_until_ready(fwd(params, x))
    assert out.shape == (B, 1, H, W), out.shape
    assert bool(jnp.isfinite(out).all())
    print("KERNEL_OK")
</pallas_src>

<mosaic_0001>
module attributes {stable_mosaic.version = 11 : i64} {
  func.func @_mm_bn_act_single_kernel(%arg0: i32, %arg1: i32, %arg2: i32, %arg3: memref<1x240x72xbf16, #tpu.memory_space<vmem>>, %arg4: memref<1x72x16xbf16, #tpu.memory_space<vmem>>, %arg5: memref<1x1x16xf32, #tpu.memory_space<vmem>>, %arg6: memref<1x1x16xf32, #tpu.memory_space<vmem>>, %arg7: memref<1x240x16xf32, #tpu.memory_space<vmem>>) attributes {dimension_semantics = [#tpu.dimension_semantics<parallel>, #tpu.dimension_semantics<parallel>, #tpu.dimension_semantics<parallel>], iteration_bounds = array<i64: 1, 1, 1>, scalar_prefetch = 0 : i64, scratch_operands = 0 : i64, tpu.core_type = #tpu.core_type<tc>, window_params = [{transform_indices = @transform_0, window_bounds = array<i64: 1, 240, 72>}, {transform_indices = @transform_1, window_bounds = array<i64: 1, 72, 16>}, {transform_indices = @transform_2, window_bounds = array<i64: 1, 1, 16>}, {transform_indices = @transform_3, window_bounds = array<i64: 1, 1, 16>}, {transform_indices = @transform_4, window_bounds = array<i64: 1, 240, 16>}]} {
    %c0 = arith.constant 0 : index
    %c0_0 = arith.constant 0 : index
    %c0_1 = arith.constant 0 : index
    %0 = vector.load %arg3[%c0, %c0_0, %c0_1] : memref<1x240x72xbf16, #tpu.memory_space<vmem>>, vector<1x240x72xbf16>
    %1 = vector.shape_cast %0 : vector<1x240x72xbf16> to vector<240x72xbf16>
    %c0_2 = arith.constant 0 : index
    %c0_3 = arith.constant 0 : index
    %c0_4 = arith.constant 0 : index
    %2 = vector.load %arg4[%c0_2, %c0_3, %c0_4] : memref<1x72x16xbf16, #tpu.memory_space<vmem>>, vector<1x72x16xbf16>
    %3 = vector.shape_cast %2 : vector<1x72x16xbf16> to vector<72x16xbf16>
    %cst = arith.constant dense<0.000000e+00> : vector<240x16xf32>
    %4 = tpu.matmul %1, %3, %cst {dimension_numbers = #tpu.dot_dimension_numbers<[1], [0], [0], [1], [0, 0, 1, 1], [], []>} : vector<240x72xbf16>, vector<72x16xbf16>, vector<240x16xf32> -> vector<240x16xf32>
    %c0_5 = arith.constant 0 : index
    %c0_6 = arith.constant 0 : index
    %c0_7 = arith.constant 0 : index
    %5 = vector.load %arg5[%c0_5, %c0_6, %c0_7] : memref<1x1x16xf32, #tpu.memory_space<vmem>>, vector<1x1x16xf32>
    %6 = vector.shape_cast %5 : vector<1x1x16xf32> to vector<1x16xf32>
    %7 = vector.broadcast %6 : vector<1x16xf32> to vector<240x16xf32>
    %8 = arith.mulf %4, %7 : vector<240x16xf32>
    %c0_8 = arith.constant 0 : index
    %c0_9 = arith.constant 0 : index
    %c0_10 = arith.constant 0 : index
    %9 = vector.load %arg6[%c0_8, %c0_9, %c0_10] : memref<1x1x16xf32, #tpu.memory_space<vmem>>, vector<1x1x16xf32>
    %10 = vector.shape_cast %9 : vector<1x1x16xf32> to vector<1x16xf32>
    %11 = vector.broadcast %10 : vector<1x16xf32> to vector<240x16xf32>
    %12 = arith.addf %8, %11 : vector<240x16xf32>
    %cst_11 = arith.constant 0.000000e+00 : f32
    %13 = vector.broadcast %cst_11 : f32 to vector<240x16xf32>
    %14 = arith.cmpf ogt, %12, %13 : vector<240x16xf32>
    %cst_12 = arith.constant 2.000000e-01 : f32
    %15 = vector.broadcast %cst_12 : f32 to vector<240x16xf32>
    %16 = arith.mulf %15, %12 : vector<240x16xf32>
    %17 = arith.select %14, %12, %16 : vector<240x16xi1>, vector<240x16xf32>
    %c0_13 = arith.constant 0 : index
    %c0_14 = arith.constant 0 : index
    %c0_15 = arith.constant 0 : index
    %18 = vector.load %arg7[%c0_13, %c0_14, %c0_15] : memref<1x240x16xf32, #tpu.memory_space<vmem>>, vector<1x240x16xf32>
    %19 = vector.shape_cast %18 : vector<1x240x16xf32> to vector<240x16xf32>
    %20 = vector.shape_cast %17 : vector<240x16xf32> to vector<1x240x16xf32>
    tpu.vector_store %arg7[%c0_13, %c0_14, %c0_15], %20 {strides = array<i32>} : memref<1x240x16xf32, #tpu.memory_space<vmem>>, vector<1x240x16xf32>,
    return
  }
  func.func @transform_0(%arg0: i32, %arg1: i32, %arg2: i32) -> (i32, i32, i32) {
    %c0_i32 = arith.constant 0 : i32
    %c0_i32_0 = arith.constant 0 : i32
    return %arg0, %arg1, %c0_i32 : i32, i32, i32
  }
  func.func @transform_1(%arg0: i32, %arg1: i32, %arg2: i32) -> (i32, i32, i32) {
    %c0_i32 = arith.constant 0 : i32
    %c0_i32_0 = arith.constant 0 : i32
    return %arg0, %c0_i32, %arg2 : i32, i32, i32
  }
  func.func @transform_2(%arg0: i32, %arg1: i32, %arg2: i32) -> (i32, i32, i32) {
    %c0_i32 = arith.constant 0 : i32
    %c0_i32_0 = arith.constant 0 : i32
    return %arg0, %c0_i32, %arg2 : i32, i32, i32
  }
  func.func @transform_3(%arg0: i32, %arg1: i32, %arg2: i32) -> (i32, i32, i32) {
    %c0_i32 = arith.constant 0 : i32
    %c0_i32_0 = arith.constant 0 : i32
    return %arg0, %c0_i32, %arg2 : i32, i32, i32
  }
  func.func @transform_4(%arg0: i32, %arg1: i32, %arg2: i32) -> (i32, i32, i32) {
    %c0_i32 = arith.constant 0 : i32
    return %arg0, %arg1, %arg2 : i32, i32, i32
  }
}

</mosaic_0001>

<bundles_post_ra>
// kernel: tpu_custom_call.1
= control target key start
LH: loop header
LB: loop body
LE: loop exit
PB: predicated region body
PF: predicated region fallthrough
CT: control target
= control target key end

     0   :  { %v720_v0 = vmov 0.0   ;;  %vm721_vm0 = vmmov 0   ;;  %vm205_vm1 = vcmask 1043456   ;;  %vm159_vm2 = vcmask 588800   ;;  %s1052_s1 = inlined_call_operand.vmem [shape: bf16[1,72,16], index: 1, kind: input, shape index: {}]   ;;  %s1053_s0 = inlined_call_operand.vmem [shape: bf16[1,240,72], index: 0, kind: input, shape index: {}]   ;;  %s1054_s2 = inlined_call_operand.vmem [shape: f32[1,1,16], index: 2, kind: input, shape index: {}]   ;;  %s1055_s3 = inlined_call_operand.vmem [shape: f32[1,1,16], index: 3, kind: input, shape index: {}]   ;;  %s1056_s4 = inlined_call_operand.vmem [shape: f32[1,240,16], index: 4, kind: output, shape index: {}]  }
   0x1   :  { %618 = vmatprep.subr.bf16.mxu0 %v720_v0  ;;  %v700_v1 = vld [vmem:[%s1052_s1] sm:$0xff]   ;;  %688 = vmatprep.subr.bf16.mxu1 %v720_v0  ;;  %v701_v2 = vld [vmem:[%s1052_s1 + $0x8] sm:$0xff]   ;;  %v702_v3 = vld [vmem:[%s1052_s1 + $0x10] sm:$0xff]   ;;  %vm526_vm3 = vcmask 130048  }
   0x2   :  { %628 = vmatprep.mubr.msk.bf16.mxu0 %vm721_vm0, %v720_v0  ;;  %660 = vmatprep.mubr.msk.bf16.mxu1 %vm721_vm0, %v720_v0  ;;  %v703_v4 = vld [vmem:[%s1052_s1 + $0x18] sm:$0xff]   ;;  %v704_v5 = vld [vmem:[%s1052_s1 + $0x20] ss:$0 sps:$4 sm:$0xff]   ;;  %v707_v9 = vld [vmem:[%s1053_s0 + $0x8] sm:$0xff]  }
   0x3   :  { %619 = vmatpush3.bf16.msra.mxu0 %v700_v1  ;;  %693 = vmatpush3.bf16.msra.mxu1 %v700_v1  ;;  %v207_v6 = vsel %vm205_vm1, %v704_v5, 0  ;;  %v705_v7 = vld [vmem:[%s1053_s0] sm:$0xff]   ;;  %v708_v10 = vld [vmem:[%s1053_s0 + $0x48] sm:$0xff]   ;;  %v709_v11 = vld [vmem:[%s1053_s0 + $0x10] sm:$0xff]  }
   0x4   :  { %620 = vmatprep.subr.bf16.mxu0 %v720_v0  ;;  %689 = vmatprep.subr.bf16.mxu1 %v720_v0  ;;  %v706_v8 = vld [vmem:[%s1053_s0 + $0x40] sm:$0xff]   ;;  %v710_v12 = vld [vmem:[%s1053_s0 + $0x50] sm:$0xff]   ;;  %v711_v13 = vld [vmem:[%s1053_s0 + $0x18] sm:$0xff]  }
   0x5   :  { %v712_v14 = vld [vmem:[%s1053_s0 + $0x58] sm:$0xff]   ;;  %v713_v15 = vld [vmem:[%s1053_s0 + $0x20] sm:$0xff]   ;;  %v715_v17 = vld [vmem:[%s1053_s0 + $0x28] sm:$0xff]  }
   0x6   :  { %v714_v16 = vld [vmem:[%s1053_s0 + $0x60] sm:$0xff]   ;;  %v716_v18 = vld [vmem:[%s1053_s0 + $0x68] sm:$0xff]   ;;  %v717_v19 = vld [vmem:[%s1053_s0 + $0x30] sm:$0xff]  }
   0x7   :  { %621 = vmatpush3.bf16.msra.mxu0 %v701_v2  ;;  %694 = vmatpush3.bf16.msra.mxu1 %v701_v2  ;;  %v718_v20 = vld [vmem:[%s1053_s0 + $0x70] sm:$0xff]   ;;  %v719_v21 = vld [vmem:[%s1053_s0 + $0x38] sm:$0xff]   ;;  %v865_v22 = vld [vmem:[%s1054_s2] ss:$0 sm:$0xff] }
   0x8   :  { %622 = vmatprep.subr.bf16.mxu0 %v720_v0  ;;  %690 = vmatprep.subr.bf16.mxu1 %v720_v0  ;;  %v870_v24 = vld [vmem:[%s1055_s3] ss:$0 sm:$0xff] }
   0xb   :  { %623 = vmatpush3.bf16.msra.mxu0 %v702_v3  ;;  %695 = vmatpush3.bf16.msra.mxu1 %v702_v3 }
   0xc   :  { %624 = vmatprep.subr.bf16.mxu0 %v720_v0  ;;  %691 = vmatprep.subr.bf16.mxu1 %v720_v0 }
   0xf   :  { %625 = vmatpush3.bf16.msra.mxu0 %v703_v4  ;;  %696 = vmatpush3.bf16.msra.mxu1 %v703_v4 }
  0x10   :  { %626 = vmatprep.subr.bf16.mxu0 %v720_v0  ;;  %692 = vmatprep.subr.bf16.mxu1 %v720_v0 }
  0x13   :  { %627 = vmatpush3.bf16.msra.mxu0 %v207_v6  ;;  %697 = vmatpush3.bf16.msra.mxu1 %v207_v6 }
  0x16   :  { %629 = vmatmul.mubr.msk.bf16.vlgmr.msra.gmra.mrb[0].mxu0 %vm159_vm2, %v705_v7  ;;  %661 = vmatmul.mubr.msk.bf16.vlgmr.msra.gmra.mrb[0].mxu1 %vm159_vm2, %v706_v8 }
  0x17   :  { %632 = vmatprep.mubr.msk.bf16.mxu0 %vm721_vm0, %v720_v0  ;;  %664 = vmatprep.mubr.msk.bf16.mxu1 %vm721_vm0, %v720_v0 }
  0x1e   :  { %633 = vmatmul.mubr.msk.bf16.gmra.mrb[4].mxu0 %vm159_vm2, %v707_v9  ;;  %665 = vmatmul.mubr.msk.bf16.gmra.mrb[4].mxu1 %vm159_vm2, %v708_v10 }
  0x1f   :  { %636 = vmatprep.mubr.msk.bf16.mxu0 %vm721_vm0, %v720_v0  ;;  %668 = vmatprep.mubr.msk.bf16.mxu1 %vm721_vm0, %v720_v0 }
  0x26   :  { %637 = vmatmul.mubr.msk.bf16.gmra.mrb[8].mxu0 %vm159_vm2, %v709_v11  ;;  %669 = vmatmul.mubr.msk.bf16.gmra.mrb[8].mxu1 %vm159_vm2, %v710_v12 }
  0x27   :  { %640 = vmatprep.mubr.msk.bf16.mxu0 %vm721_vm0, %v720_v0  ;;  %672 = vmatprep.mubr.msk.bf16.mxu1 %vm721_vm0, %v720_v0 }
  0x2e   :  { %641 = vmatmul.mubr.msk.bf16.gmra.mrb[12].mxu0 %vm159_vm2, %v711_v13  ;;  %673 = vmatmul.mubr.msk.bf16.gmra.mrb[12].mxu1 %vm159_vm2, %v712_v14 }
  0x2f   :  { %644 = vmatprep.mubr.msk.bf16.mxu0 %vm721_vm0, %v720_v0  ;;  %676 = vmatprep.mubr.msk.bf16.mxu1 %vm721_vm0, %v720_v0 }
  0x36   :  { %645 = vmatmul.mubr.msk.bf16.gmra.mrb[16].mxu0 %vm159_vm2, %v713_v15  ;;  %677 = vmatmul.mubr.msk.bf16.gmra.mrb[16].mxu1 %vm159_vm2, %v714_v16 }
  0x37   :  { %648 = vmatprep.mubr.msk.bf16.mxu0 %vm721_vm0, %v720_v0  ;;  %680 = vmatprep.mubr.msk.bf16.mxu1 %vm721_vm0, %v720_v0 }
  0x3e   :  { %649 = vmatmul.mubr.msk.bf16.gmra.mrb[20].mxu0 %vm159_vm2, %v715_v17  ;;  %681 = vmatmul.mubr.msk.bf16.gmra.mrb[20].mxu1 %vm159_vm2, %v716_v18 }
  0x3f   :  { %652 = vmatprep.mubr.msk.bf16.mxu0 %vm721_vm0, %v720_v0  ;;  %684 = vmatprep.mubr.msk.bf16.mxu1 %vm721_vm0, %v720_v0 }
  0x46   :  { %653 = vmatmul.mubr.msk.bf16.gmra.mrb[24].mxu0 %vm159_vm2, %v717_v19  ;;  %685 = vmatmul.mubr.msk.bf16.gmra.mrb[24].mxu1 %vm159_vm2, %v718_v20 }
  0x47   :  { %656 = vmatprep.mubr.msk.bf16.mxu0 %vm721_vm0, %v720_v0 }
  0x4e   :  { %657 = vmatmul.mubr.msk.bf16.gmra.mrb[28].mxu0 %vm159_vm2, %v719_v21 }
  0xe9   :  { %v243_v23 = vpop.f32.mrb[0].mxu0  ;;  %v307_v25 = vpop.f32.mrb[0].mxu1 }
  0xea   :  { %v369_v26 = vmul.f32 %v865_v22, %v243_v23  ;;  %v630_v27 = vpop.f32.mrb[1].mxu0  ;;  %v385_v28 = vmul.f32 %v865_v22, %v307_v25  ;;  %v662_v29 = vpop.f32.mrb[1].mxu1 }
  0xeb   :  { %v246_v30 = vpop.f32.mrb[2].mxu0  ;;  %v310_v31 = vpop.f32.mrb[2].mxu1 }
  0xec   :  { %v406_v32 = vadd.f32 %v870_v24, %v369_v26  ;;  %v370_v33 = vmul.f32 %v865_v22, %v246_v30  ;;  %v631_v34 = vpop.f32.mrb[3].mxu0  ;;  %v422_v35 = vadd.f32 %v870_v24, %v385_v28  ;;  %v386_v36 = vmul.f32 %v865_v22, %v310_v31  ;;  %v663_v37 = vpop.f32.mrb[3].mxu1 }
  0xee   :  { %vm436_vm4 = vcmp.gt.f32.partialorder %v406_v32, 0.0  ;;  %v466_v38 = vmul.f32 0.2, %v406_v32  ;;  %v407_v39 = vadd.f32 %v870_v24, %v370_v33  ;;  %vm452_vm5 = vcmp.gt.f32.partialorder %v422_v35, 0.0 }
  0xef   :  { %v482_v40 = vmul.f32 0.2, %v422_v35  ;;  %v423_v41 = vadd.f32 %v870_v24, %v386_v36 }
  0xf0   :  { %v496_v42 = vsel %vm436_vm4, %v406_v32, %v466_v38  ;;  %vm437_vm6 = vcmp.gt.f32.partialorder %v407_v39, 0.0  ;;  %v467_v43 = vmul.f32 0.2, %v407_v39 }
  0xf1   :  { %527 = vst.msk [vmem:[%s1056_s4] sm:$0xff] %vm526_vm3, %v496_v42  ;;  %v512_v44 = vsel %vm452_vm5, %v422_v35, %v482_v40  ;;  %vm453_vm7 = vcmp.gt.f32.partialorder %v423_v41, 0.0  ;;  %v483_v45 = vmul.f32 0.2, %v423_v41  ;;  %v251_v46 = vpop.f32.mrb[4].mxu0  ;;  %v315_v47 = vpop.f32.mrb[4].mxu1 }
  0xf2   :  { %v497_v48 = vsel %vm437_vm6, %v407_v39, %v467_v43  ;;  %543 = vst.msk [vmem:[%s1056_s4 + $0x80] sm:$0xff] %vm526_vm3, %v512_v44  ;;  %v371_v49 = vmul.f32 %v865_v22, %v251_v46  ;;  %v634_v50 = vpop.f32.mrb[5].mxu0  ;;  %v387_v51 = vmul.f32 %v865_v22, %v315_v47  ;;  %v666_v52 = vpop.f32.mrb[5].mxu1 }
  0xf3   :  { %528 = vst.msk [vmem:[%s1056_s4 + $0x8] sm:$0xff] %vm526_vm3, %v497_v48  ;;  %v513_v53 = vsel %vm453_vm7, %v423_v41, %v483_v45  ;;  %v254_v54 = vpop.f32.mrb[6].mxu0  ;;  %v318_v55 = vpop.f32.mrb[6].mxu1 }
  0xf4   :  { %544 = vst.msk [vmem:[%s1056_s4 + $0x88] sm:$0xff] %vm526_vm3, %v513_v53  ;;  %v408_v56 = vadd.f32 %v870_v24, %v371_v49  ;;  %v372_v57 = vmul.f32 %v865_v22, %v254_v54  ;;  %v635_v58 = vpop.f32.mrb[7].mxu0  ;;  %v424_v59 = vadd.f32 %v870_v24, %v387_v51  ;;  %v388_v60 = vmul.f32 %v865_v22, %v318_v55  ;;  %v667_v61 = vpop.f32.mrb[7].mxu1 }
  0xf6   :  { %vm438_vm8 = vcmp.gt.f32.partialorder %v408_v56, 0.0  ;;  %v468_v62 = vmul.f32 0.2, %v408_v56  ;;  %v409_v63 = vadd.f32 %v870_v24, %v372_v57  ;;  %vm454_vm9 = vcmp.gt.f32.partialorder %v424_v59, 0.0 }
  0xf7   :  { %v484_v0 = vmul.f32 0.2, %v424_v59  ;;  %v425_v1 = vadd.f32 %v870_v24, %v388_v60 }
  0xf8   :  { %v498_v2 = vsel %vm438_vm8, %v408_v56, %v468_v62  ;;  %vm439_vm10 = vcmp.gt.f32.partialorder %v409_v63, 0.0  ;;  %v469_v3 = vmul.f32 0.2, %v409_v63 }
  0xf9   :  { %529 = vst.msk [vmem:[%s1056_s4 + $0x10] sm:$0xff] %vm526_vm3, %v498_v2  ;;  %v514_v4 = vsel %vm454_vm9, %v424_v59, %v484_v0  ;;  %vm455_vm11 = vcmp.gt.f32.partialorder %v425_v1, 0.0  ;;  %v485_v5 = vmul.f32 0.2, %v425_v1  ;;  %v259_v6 = vpop.f32.mrb[8].mxu0  ;;  %v323_v7 = vpop.f32.mrb[8].mxu1 }
  0xfa   :  { %v499_v8 = vsel %vm439_vm10, %v409_v63, %v469_v3  ;;  %545 = vst.msk [vmem:[%s1056_s4 + $0x90] sm:$0xff] %vm526_vm3, %v514_v4  ;;  %v373_v9 = vmul.f32 %v865_v22, %v259_v6  ;;  %v638_v10 = vpop.f32.mrb[9].mxu0  ;;  %v389_v11 = vmul.f32 %v865_v22, %v323_v7  ;;  %v670_v12 = vpop.f32.mrb[9].mxu1 }
  0xfb   :  { %530 = vst.msk [vmem:[%s1056_s4 + $0x18] sm:$0xff] %vm526_vm3, %v499_v8  ;;  %v515_v13 = vsel %vm455_vm11, %v425_v1, %v485_v5  ;;  %v262_v14 = vpop.f32.mrb[10].mxu0  ;;  %v326_v15 = vpop.f32.mrb[10].mxu1 }
  0xfc   :  { %546 = vst.msk [vmem:[%s1056_s4 + $0x98] sm:$0xff] %vm526_vm3, %v515_v13  ;;  %v410_v16 = vadd.f32 %v870_v24, %v373_v9  ;;  %v374_v17 = vmul.f32 %v865_v22, %v262_v14  ;;  %v639_v18 = vpop.f32.mrb[11].mxu0  ;;  %v426_v19 = vadd.f32 %v870_v24, %v389_v11  ;;  %v390_v20 = vmul.f32 %v865_v22, %v326_v15  ;;  %v671_v21 = vpop.f32.mrb[11].mxu1 }
  0xfe   :  { %vm440_vm12 = vcmp.gt.f32.partialorder %v410_v16, 0.0  ;;  %v470_v23 = vmul.f32 0.2, %v410_v16  ;;  %v411_v25 = vadd.f32 %v870_v24, %v374_v17  ;;  %vm456_vm13 = vcmp.gt.f32.partialorder %v426_v19, 0.0 }
  0xff   :  { %v486_v26 = vmul.f32 0.2, %v426_v19  ;;  %v427_v27 = vadd.f32 %v870_v24, %v390_v20 }
 0x100   :  { %v500_v28 = vsel %vm440_vm12, %v410_v16, %v470_v23  ;;  %vm441_vm14 = vcmp.gt.f32.partialorder %v411_v25, 0.0  ;;  %v471_v29 = vmul.f32 0.2, %v411_v25 }
 0x101   :  { %531 = vst.msk [vmem:[%s1056_s4 + $0x20] sm:$0xff] %vm526_vm3, %v500_v28  ;;  %v516_v30 = vsel %vm456_vm13, %v426_v19, %v486_v26  ;;  %vm457_vm15 = vcmp.gt.f32.partialorder %v427_v27, 0.0  ;;  %v487_v31 = vmul.f32 0.2, %v427_v27  ;;  %v267_v32 = vpop.f32.mrb[12].mxu0  ;;  %v331_v33 = vpop.f32.mrb[12].mxu1 }
 0x102   :  { %v501_v34 = vsel %vm441_vm14, %v411_v25, %v471_v29  ;;  %547 = vst.msk [vmem:[%s1056_s4 + $0xa0] sm:$0xff] %vm526_vm3, %v516_v30  ;;  %v375_v35 = vmul.f32 %v865_v22, %v267_v32  ;;  %v642_v36 = vpop.f32.mrb[13].mxu0  ;;  %v391_v37 = vmul.f32 %v865_v22, %v331_v33  ;;  %v674_v38 = vpop.f32.mrb[13].mxu1 }
 0x103   :  { %532 = vst.msk [vmem:[%s1056_s4 + $0x28] sm:$0xff] %vm526_vm3, %v501_v34  ;;  %v517_v39 = vsel %vm457_vm15, %v427_v27, %v487_v31  ;;  %v270_v40 = vpop.f32.mrb[14].mxu0  ;;  %v334_v41 = vpop.f32.mrb[14].mxu1 }
 0x104   :  { %548 = vst.msk [vmem:[%s1056_s4 + $0xa8] sm:$0xff] %vm526_vm3, %v517_v39  ;;  %v412_v42 = vadd.f32 %v870_v24, %v375_v35  ;;  %v376_v43 = vmul.f32 %v865_v22, %v270_v40  ;;  %v643_v44 = vpop.f32.mrb[15].mxu0  ;;  %v428_v45 = vadd.f32 %v870_v24, %v391_v37  ;;  %v392_v46 = vmul.f32 %v865_v22, %v334_v41  ;;  %v675_v47 = vpop.f32.mrb[15].mxu1 }
 0x106   :  { %vm442_vm0 = vcmp.gt.f32.partialorder %v412_v42, 0.0  ;;  %v472_v48 = vmul.f32 0.2, %v412_v42  ;;  %v413_v49 = vadd.f32 %v870_v24, %v376_v43  ;;  %vm458_vm1 = vcmp.gt.f32.partialorder %v428_v45, 0.0 }
 0x107   :  { %v488_v50 = vmul.f32 0.2, %v428_v45  ;;  %v429_v51 = vadd.f32 %v870_v24, %v392_v46 }
 0x108   :  { %v502_v52 = vsel %vm442_vm0, %v412_v42, %v472_v48  ;;  %vm443_vm2 = vcmp.gt.f32.partialorder %v413_v49, 0.0  ;;  %v473_v53 = vmul.f32 0.2, %v413_v49 }
 0x109   :  { %533 = vst.msk [vmem:[%s1056_s4 + $0x30] sm:$0xff] %vm526_vm3, %v502_v52  ;;  %v518_v54 = vsel %vm458_vm1, %v428_v45, %v488_v50  ;;  %vm459_vm4 = vcmp.gt.f32.partialorder %v429_v51, 0.0  ;;  %v489_v55 = vmul.f32 0.2, %v429_v51  ;;  %v275_v56 = vpop.f32.mrb[16].mxu0  ;;  %v339_v57 = vpop.f32.mrb[16].mxu1 }
 0x10a   :  { %v503_v58 = vsel %vm443_vm2, %v413_v49, %v473_v53  ;;  %549 = vst.msk [vmem:[%s1056_s4 + $0xb0] sm:$0xff] %vm526_vm3, %v518_v54  ;;  %v377_v59 = vmul.f32 %v865_v22, %v275_v56  ;;  %v646_v60 = vpop.f32.mrb[17].mxu0  ;;  %v393_v61 = vmul.f32 %v865_v22, %v339_v57  ;;  %v678_v62 = vpop.f32.mrb[17].mxu1 }
 0x10b   :  { %534 = vst.msk [vmem:[%s1056_s4 + $0x38] sm:$0xff] %vm526_vm3, %v503_v58  ;;  %v519_v63 = vsel %vm459_vm4, %v429_v51, %v489_v55  ;;  %v278_v0 = vpop.f32.mrb[18].mxu0  ;;  %v342_v1 = vpop.f32.mrb[18].mxu1 }
 0x10c   :  { %550 = vst.msk [vmem:[%s1056_s4 + $0xb8] sm:$0xff] %vm526_vm3, %v519_v63  ;;  %v414_v2 = vadd.f32 %v870_v24, %v377_v59  ;;  %v378_v3 = vmul.f32 %v865_v22, %v278_v0  ;;  %v647_v4 = vpop.f32.mrb[19].mxu0  ;;  %v430_v5 = vadd.f32 %v870_v24, %v393_v61  ;;  %v394_v6 = vmul.f32 %v865_v22, %v342_v1  ;;  %v679_v7 = vpop.f32.mrb[19].mxu1 }
 0x10e   :  { %vm444_vm5 = vcmp.gt.f32.partialorder %v414_v2, 0.0  ;;  %v474_v8 = vmul.f32 0.2, %v414_v2  ;;  %v415_v9 = vadd.f32 %v870_v24, %v378_v3  ;;  %vm460_vm6 = vcmp.gt.f32.partialorder %v430_v5, 0.0 }
 0x10f   :  { %v490_v10 = vmul.f32 0.2, %v430_v5  ;;  %v431_v11 = vadd.f32 %v870_v24, %v394_v6 }
 0x110   :  { %v504_v12 = vsel %vm444_vm5, %v414_v2, %v474_v8  ;;  %vm445_vm7 = vcmp.gt.f32.partialorder %v415_v9, 0.0  ;;  %v475_v13 = vmul.f32 0.2, %v415_v9 }
 0x111   :  { %535 = vst.msk [vmem:[%s1056_s4 + $0x40] sm:$0xff] %vm526_vm3, %v504_v12  ;;  %v520_v14 = vsel %vm460_vm6, %v430_v5, %v490_v10  ;;  %vm461_vm8 = vcmp.gt.f32.partialorder %v431_v11, 0.0  ;;  %v491_v15 = vmul.f32 0.2, %v431_v11  ;;  %v283_v16 = vpop.f32.mrb[20].mxu0  ;;  %v347_v17 = vpop.f32.mrb[20].mxu1 }
 0x112   :  { %v505_v18 = vsel %vm445_vm7, %v415_v9, %v475_v13  ;;  %551 = vst.msk [vmem:[%s1056_s4 + $0xc0] sm:$0xff] %vm526_vm3, %v520_v14  ;;  %v379_v19 = vmul.f32 %v865_v22, %v283_v16  ;;  %v650_v20 = vpop.f32.mrb[21].mxu0  ;;  %v395_v21 = vmul.f32 %v865_v22, %v347_v17  ;;  %v682_v23 = vpop.f32.mrb[21].mxu1 }
 0x113   :  { %536 = vst.msk [vmem:[%s1056_s4 + $0x48] sm:$0xff] %vm526_vm3, %v505_v18  ;;  %v521_v25 = vsel %vm461_vm8, %v431_v11, %v491_v15  ;;  %v286_v26 = vpop.f32.mrb[22].mxu0  ;;  %v350_v27 = vpop.f32.mrb[22].mxu1 }
 0x114   :  { %552 = vst.msk [vmem:[%s1056_s4 + $0xc8] sm:$0xff] %vm526_vm3, %v521_v25  ;;  %v416_v28 = vadd.f32 %v870_v24, %v379_v19  ;;  %v380_v29 = vmul.f32 %v865_v22, %v286_v26  ;;  %v651_v30 = vpop.f32.mrb[23].mxu0  ;;  %v432_v31 = vadd.f32 %v870_v24, %v395_v21  ;;  %v396_v32 = vmul.f32 %v865_v22, %v350_v27  ;;  %v683_v33 = vpop.f32.mrb[23].mxu1 }
 0x116   :  { %vm446_vm9 = vcmp.gt.f32.partialorder %v416_v28, 0.0  ;;  %v476_v34 = vmul.f32 0.2, %v416_v28  ;;  %v417_v35 = vadd.f32 %v870_v24, %v380_v29  ;;  %vm462_vm10 = vcmp.gt.f32.partialorder %v432_v31, 0.0 }
 0x117   :  { %v492_v36 = vmul.f32 0.2, %v432_v31  ;;  %v433_v37 = vadd.f32 %v870_v24, %v396_v32 }
 0x118   :  { %v506_v38 = vsel %vm446_vm9, %v416_v28, %v476_v34  ;;  %vm447_vm11 = vcmp.gt.f32.partialorder %v417_v35, 0.0  ;;  %v477_v39 = vmul.f32 0.2, %v417_v35 }
 0x119   :  { %537 = vst.msk [vmem:[%s1056_s4 + $0x50] sm:$0xff] %vm526_vm3, %v506_v38  ;;  %v522_v40 = vsel %vm462_vm10, %v432_v31, %v492_v36  ;;  %vm463_vm12 = vcmp.gt.f32.partialorder %v433_v37, 0.0  ;;  %v493_v41 = vmul.f32 0.2, %v433_v37  ;;  %v291_v42 = vpop.f32.mrb[24].mxu0  ;;  %v355_v43 = vpop.f32.mrb[24].mxu1 }
 0x11a   :  { %v507_v44 = vsel %vm447_vm11, %v417_v35, %v477_v39  ;;  %553 = vst.msk [vmem:[%s1056_s4 + $0xd0] sm:$0xff] %vm526_vm3, %v522_v40  ;;  %v381_v45 = vmul.f32 %v865_v22, %v291_v42  ;;  %v654_v46 = vpop.f32.mrb[25].mxu0  ;;  %v397_v47 = vmul.f32 %v865_v22, %v355_v43  ;;  %v686_v48 = vpop.f32.mrb[25].mxu1 }
 0x11b   :  { %538 = vst.msk [vmem:[%s1056_s4 + $0x58] sm:$0xff] %vm526_vm3, %v507_v44  ;;  %v523_v49 = vsel %vm463_vm12, %v433_v37, %v493_v41  ;;  %v294_v50 = vpop.f32.mrb[26].mxu0  ;;  %v358_v51 = vpop.f32.mrb[26].mxu1 }
 0x11c   :  { %554 = vst.msk [vmem:[%s1056_s4 + $0xd8] sm:$0xff] %vm526_vm3, %v523_v49  ;;  %v418_v52 = vadd.f32 %v870_v24, %v381_v45  ;;  %v382_v53 = vmul.f32 %v865_v22, %v294_v50  ;;  %v655_v54 = vpop.f32.mrb[27].mxu0  ;;  %v434_v55 = vadd.f32 %v870_v24, %v397_v47  ;;  %v398_v56 = vmul.f32 %v865_v22, %v358_v51  ;;  %v687_v57 = vpop.f32.mrb[27].mxu1 }
 0x11e   :  { %vm448_vm13 = vcmp.gt.f32.partialorder %v418_v52, 0.0  ;;  %v478_v58 = vmul.f32 0.2, %v418_v52  ;;  %v419_v59 = vadd.f32 %v870_v24, %v382_v53  ;;  %vm464_vm14 = vcmp.gt.f32.partialorder %v434_v55, 0.0 }
 0x11f   :  { %v494_v60 = vmul.f32 0.2, %v434_v55  ;;  %v435_v61 = vadd.f32 %v870_v24, %v398_v56 }
 0x120   :  { %v508_v62 = vsel %vm448_vm13, %v418_v52, %v478_v58  ;;  %vm449_vm15 = vcmp.gt.f32.partialorder %v419_v59, 0.0  ;;  %v479_v63 = vmul.f32 0.2, %v419_v59 }
 0x121   :  { %539 = vst.msk [vmem:[%s1056_s4 + $0x60] sm:$0xff] %vm526_vm3, %v508_v62  ;;  %v524_v0 = vsel %vm464_vm14, %v434_v55, %v494_v60  ;;  %vm465_vm0 = vcmp.gt.f32.partialorder %v435_v61, 0.0  ;;  %v495_v1 = vmul.f32 0.2, %v435_v61  ;;  %v299_v2 = vpop.f32.mrb[28].mxu0 }
 0x122   :  { %v509_v3 = vsel %vm449_vm15, %v419_v59, %v479_v63  ;;  %555 = vst.msk [vmem:[%s1056_s4 + $0xe0] sm:$0xff] %vm526_vm3, %v524_v0  ;;  %v383_v4 = vmul.f32 %v865_v22, %v299_v2  ;;  %v658_v5 = vpop.f32.mrb[29].mxu0 }
 0x123   :  { %540 = vst.msk [vmem:[%s1056_s4 + $0x68] sm:$0xff] %vm526_vm3, %v509_v3  ;;  %v525_v6 = vsel %vm465_vm0, %v435_v61, %v495_v1  ;;  %v302_v7 = vpop.f32.mrb[30].mxu0 }
 0x124   :  { %556 = vst.msk [vmem:[%s1056_s4 + $0xe8] sm:$0xff] %vm526_vm3, %v525_v6  ;;  %v420_v8 = vadd.f32 %v870_v24, %v383_v4  ;;  %v384_v9 = vmul.f32 %v865_v22, %v302_v7  ;;  %v659_v10 = vpop.f32.mrb[31].mxu0 }
 0x126   :  { %vm450_vm1 = vcmp.gt.f32.partialorder %v420_v8, 0.0  ;;  %v480_v11 = vmul.f32 0.2, %v420_v8  ;;  %v421_v12 = vadd.f32 %v870_v24, %v384_v9 }
 0x128   :  { %v510_v13 = vsel %vm450_vm1, %v420_v8, %v480_v11  ;;  %vm451_vm2 = vcmp.gt.f32.partialorder %v421_v12, 0.0  ;;  %v481_v14 = vmul.f32 0.2, %v421_v12 }
 0x129   :  { %541 = vst.msk [vmem:[%s1056_s4 + $0x70] sm:$0xff] %vm526_vm3, %v510_v13 }
 0x12a   :  { %v511_v15 = vsel %vm451_vm2, %v421_v12, %v481_v14 }
 0x12b   :  { %542 = vst.msk [vmem:[%s1056_s4 + $0x78] sm:$0xff] %vm526_vm3, %v511_v15 }

</bundles_post_ra>
